<compile_context>
chip_gen: v7x
topology: tpu7x:2x2x1
jax: 0.10.0
libtpu: 0.0.40
codegen_flags: <defaults>
</compile_context>

<pallas_src>
import functools

import jax
import jax.numpy as jnp
from jax.experimental import pallas as pl
from jax.experimental.pallas import tpu as pltpu

_PAD_LOGIT = -1.0e4   # sigmoid(-1e4) == 0 and softplus(-1e4) == 0 exactly in f32


def _round_up(x, m):
    return ((x + m - 1) // m) * m


def _focal_loss_kernel(pred_ref, tgt_ref, out_ref, *, gamma, alpha):
    """One (tm, L) lane-dense tile of the focal-loss partial reduction.

    pred_ref, tgt_ref : (tm, L) tiles of logits / targets
    out_ref           : (8, L) f32 partial-sum accumulator for this split,
                        resident in VMEM across the inner ("arbitrary") axis.
    """
    i = pl.program_id(1)

    @pl.when(i == 0)
    def _():
        out_ref[...] = jnp.zeros_like(out_ref)

    x = pred_ref[...].astype(jnp.float32)   # logits
    t = tgt_ref[...].astype(jnp.float32)    # targets (one-hot)

    # Shared exp(-|x|): used by both the stable BCE-with-logits term and sigmoid.
    e = jnp.exp(-jnp.abs(x))                              # 1 EUP exp
    # BCEWithLogits (reduction='none'), numerically stable form.
    bce = jnp.maximum(x, 0.0) - x * t + jnp.log1p(e)      # 1 EUP log

    # sigmoid(x) from the shared exp: approx reciprocal (EUP) + 1 Newton step (VPU).
    denom = 1.0 + e
    r = pl.reciprocal(denom, approx=True)
    r = r * (2.0 - denom * r)                             # refine to ~f32 accuracy
    p = jnp.where(x >= 0.0, r, e * r)

    # 1 - p_t  ==  t*(1-p) + (1-t)*p
    q = t * (1.0 - p) + (1.0 - t) * p

    if gamma:
        g = float(gamma)
        if g.is_integer() and 1.0 <= g <= 8.0:
            modulating = q
            for _ in range(int(g) - 1):
                modulating = modulating * q               # VPU muls, no pow/EUP
        else:
            modulating = jnp.power(q, g)                  # non-integer gamma fallback
        focal = modulating * bce
    else:
        focal = bce

    if alpha is not None:
        a = float(alpha)
        focal = (t * a + (1.0 - t) * (1.0 - a)) * focal

    tm, L = focal.shape
    # Sublane-group partial reduce (tm, L) -> (8, L): pure VPU adds, no per-step
    # cross-lane reduce and no serialized scalar accumulator chain.
    out_ref[...] += focal.reshape(tm // 8, 8, L).sum(axis=0)


def focal_loss(prediction_tensor, target_tensor, *, gamma=2.0, alpha=0.25,
               lane_width=1024, row_tile=512, num_splits=2):
    """Pallas implementation of FocalLoss.forward -> scalar mean loss."""
    assert prediction_tensor.shape == target_tensor.shape
    n = 1
    for d in prediction_tensor.shape:
        n *= d

    L = lane_width                       # multiple of 128 -> full-width vregs
    pred_flat = prediction_tensor.reshape(-1)
    tgt_flat = target_tensor.reshape(-1)

    rows = pl.cdiv(n, L)
    # Row tile: biggest divisor-friendly tile <= row_tile, always a multiple of 8.
    tm = min(row_tile, _round_up(pl.cdiv(rows, num_splits), 8))
    rows_padded = _round_up(rows, tm * num_splits)
    n_padded = rows_padded * L

    pad = n_padded - n
    if pad:
        # Padding logits with a large negative value and targets with zero gives an
        # exactly-zero focal contribution, so the padded tail never needs masking.
        pred_flat = jnp.concatenate(
            [pred_flat, jnp.full((pad,), _PAD_LOGIT, pred_flat.dtype)])
        tgt_flat = jnp.concatenate(
            [tgt_flat, jnp.zeros((pad,), tgt_flat.dtype)])

    pred2d = pred_flat.reshape(rows_padded, L)
    tgt2d = tgt_flat.reshape(rows_padded, L)

    n_inner = rows_padded // (tm * num_splits)
    grid = (num_splits, n_inner)

    kernel = functools.partial(_focal_loss_kernel, gamma=gamma, alpha=alpha)

    partials = pl.pallas_call(
        kernel,
        out_shape=jax.ShapeDtypeStruct((num_splits * 8, L), jnp.float32),
        grid_spec=pltpu.PrefetchScalarGridSpec(
            num_scalar_prefetch=0,
            grid=grid,
            in_specs=[
                pl.BlockSpec((tm, L), lambda c, i: (c * n_inner + i, 0)),
                pl.BlockSpec((tm, L), lambda c, i: (c * n_inner + i, 0)),
            ],
            out_specs=pl.BlockSpec((8, L), lambda c, i: (c, 0)),
        ),
        compiler_params=pltpu.CompilerParams(
            dimension_semantics=("parallel", "arbitrary"),
            vmem_limit_bytes=32 * 1024 * 1024),
    )(pred2d, tgt2d)

    # Final tiny reduction + mean over the *real* element count in the wrapper.
    return jnp.sum(partials) / jnp.float32(n)


def _focal_loss_ref(pred, tgt, gamma=2.0, alpha=0.25):
    """Pure-JAX reference mirroring the PyTorch module."""
    x = pred.astype(jnp.float32)
    t = tgt.astype(jnp.float32)
    bce = jnp.maximum(x, 0.0) - x * t + jnp.log1p(jnp.exp(-jnp.abs(x)))
    p = jax.nn.sigmoid(x)
    p_t = t * p + (1 - t) * (1 - p)
    mod = jnp.power(1.0 - p_t, gamma) if gamma else 1.0
    aw = t * alpha + (1 - t) * (1 - alpha) if alpha is not None else 1.0
    return jnp.mean(mod * aw * bce)


if __name__ == "__main__":
    key = jax.random.PRNGKey(0)
    k1, k2 = jax.random.split(key)

    # [batch_size, num_anchors, num_classes]
    B, A, C = 2, 8, 32
    prediction = jax.random.normal(k1, (B, A, C), dtype=jnp.float32)
    # one-hot targets: random class index per (batch, anchor)
    cls = jax.random.randint(k2, (B, A), 0, C)
    target = jax.nn.one_hot(cls, C, dtype=jnp.float32)

    loss = focal_loss(prediction, target, gamma=2.0, alpha=0.25)
    loss = jax.block_until_ready(loss)

    ref = _focal_loss_ref(prediction, target, gamma=2.0, alpha=0.25)
    assert jnp.allclose(loss, ref, rtol=1e-4, atol=1e-6), (loss, ref)

    print("KERNEL_OK")
</pallas_src>

<mosaic_0001>
module attributes {stable_mosaic.version = 11 : i64} {
  func.func @_focal_loss_kernel(%arg0: i32, %arg1: i32, %arg2: memref<8x1024xf32, #tpu.memory_space<vmem>>, %arg3: memref<8x1024xf32, #tpu.memory_space<vmem>>, %arg4: memref<8x1024xf32, #tpu.memory_space<vmem>>) attributes {dimension_semantics = [#tpu.dimension_semantics<parallel>, #tpu.dimension_semantics<arbitrary>], iteration_bounds = array<i64: 2, 1>, scalar_prefetch = 0 : i64, scratch_operands = 0 : i64, tpu.core_type = #tpu.core_type<tc>, window_params = [{transform_indices = @transform_0, window_bounds = array<i64: 8, 1024>}, {transform_indices = @transform_1, window_bounds = array<i64: 8, 1024>}, {transform_indices = @transform_2, window_bounds = array<i64: 8, 1024>}]} {
    %c0_i32 = arith.constant 0 : i32
    %0 = arith.cmpi eq, %arg1, %c0_i32 : i32
    %1 = arith.extui %0 : i1 to i32
    %c0_i32_0 = arith.constant 0 : i32
    %2 = arith.cmpi ne, %1, %c0_i32_0 : i32
    scf.if %2 {
      %cst_18 = arith.constant 0.000000e+00 : f32
      %48 = vector.broadcast %cst_18 : f32 to vector<8x1024xf32>
      %c0_19 = arith.constant 0 : index
      %c0_20 = arith.constant 0 : index
      %49 = vector.load %arg4[%c0_19, %c0_20] : memref<8x1024xf32, #tpu.memory_space<vmem>>, vector<8x1024xf32>
      tpu.vector_store %arg4[%c0_19, %c0_20], %48 {strides = array<i32>} : memref<8x1024xf32, #tpu.memory_space<vmem>>, vector<8x1024xf32>,
    } else {
    }
    %c0 = arith.constant 0 : index
    %c0_1 = arith.constant 0 : index
    %3 = vector.load %arg2[%c0, %c0_1] : memref<8x1024xf32, #tpu.memory_space<vmem>>, vector<8x1024xf32>
    %c0_2 = arith.constant 0 : index
    %c0_3 = arith.constant 0 : index
    %4 = vector.load %arg3[%c0_2, %c0_3] : memref<8x1024xf32, #tpu.memory_space<vmem>>, vector<8x1024xf32>
    %5 = math.absf %3 : vector<8x1024xf32>
    %cst = arith.constant 0.000000e+00 : f32
    %6 = vector.broadcast %cst : f32 to vector<8x1024xf32>
    %7 = arith.subf %6, %5 : vector<8x1024xf32>
    %8 = math.exp %7 : vector<8x1024xf32>
    %cst_4 = arith.constant 0.000000e+00 : f32
    %9 = vector.broadcast %cst_4 : f32 to vector<8x1024xf32>
    %10 = arith.maximumf %3, %9 : vector<8x1024xf32>
    %11 = arith.mulf %3, %4 : vector<8x1024xf32>
    %12 = arith.subf %10, %11 : vector<8x1024xf32>
    %13 = math.log1p %8 : vector<8x1024xf32>
    %14 = arith.addf %12, %13 : vector<8x1024xf32>
    %cst_5 = arith.constant 1.000000e+00 : f32
    %15 = vector.broadcast %cst_5 : f32 to vector<8x1024xf32>
    %16 = arith.addf %15, %8 : vector<8x1024xf32>
    %17 = tpu.reciprocal %16 {approx = true} : vector<8x1024xf32> -> vector<8x1024xf32>
    %18 = arith.mulf %16, %17 : vector<8x1024xf32>
    %cst_6 = arith.constant 2.000000e+00 : f32
    %19 = vector.broadcast %cst_6 : f32 to vector<8x1024xf32>
    %20 = arith.subf %19, %18 : vector<8x1024xf32>
    %21 = arith.mulf %17, %20 : vector<8x1024xf32>
    %cst_7 = arith.constant 0.000000e+00 : f32
    %22 = vector.broadcast %cst_7 : f32 to vector<8x1024xf32>
    %23 = arith.cmpf oge, %3, %22 : vector<8x1024xf32>
    %24 = arith.mulf %8, %21 : vector<8x1024xf32>
    %25 = arith.select %23, %21, %24 : vector<8x1024xi1>, vector<8x1024xf32>
    %cst_8 = arith.constant 1.000000e+00 : f32
    %26 = vector.broadcast %cst_8 : f32 to vector<8x1024xf32>
    %27 = arith.subf %26, %25 : vector<8x1024xf32>
    %28 = arith.mulf %4, %27 : vector<8x1024xf32>
    %cst_9 = arith.constant 1.000000e+00 : f32
    %29 = vector.broadcast %cst_9 : f32 to vector<8x1024xf32>
    %30 = arith.subf %29, %4 : vector<8x1024xf32>
    %31 = arith.mulf %30, %25 : vector<8x1024xf32>
    %32 = arith.addf %28, %31 : vector<8x1024xf32>
    %33 = arith.mulf %32, %32 : vector<8x1024xf32>
    %34 = arith.mulf %33, %14 : vector<8x1024xf32>
    %cst_10 = arith.constant 2.500000e-01 : f32
    %35 = vector.broadcast %cst_10 : f32 to vector<8x1024xf32>
    %36 = arith.mulf %4, %35 : vector<8x1024xf32>
    %cst_11 = arith.constant 1.000000e+00 : f32
    %37 = vector.broadcast %cst_11 : f32 to vector<8x1024xf32>
    %38 = arith.subf %37, %4 : vector<8x1024xf32>
    %cst_12 = arith.constant 7.500000e-01 : f32
    %39 = vector.broadcast %cst_12 : f32 to vector<8x1024xf32>
    %40 = arith.mulf %38, %39 : vector<8x1024xf32>
    %41 = arith.addf %36, %40 : vector<8x1024xf32>
    %42 = arith.mulf %41, %34 : vector<8x1024xf32>
    %c0_13 = arith.constant 0 : index
    %c0_14 = arith.constant 0 : index
    %43 = vector.load %arg4[%c0_13, %c0_14] : memref<8x1024xf32, #tpu.memory_space<vmem>>, vector<8x1024xf32>
    %44 = vector.shape_cast %42 : vector<8x1024xf32> to vector<1x8x1024xf32>
    %cst_15 = arith.constant dense<0.000000e+00> : vector<8x1024xf32>
    %45 = vector.multi_reduction <add>, %44, %cst_15 [0] : vector<1x8x1024xf32> to vector<8x1024xf32>
    %46 = arith.addf %43, %45 : vector<8x1024xf32>
    %c0_16 = arith.constant 0 : index
    %c0_17 = arith.constant 0 : index
    %47 = vector.load %arg4[%c0_16, %c0_17] : memref<8x1024xf32, #tpu.memory_space<vmem>>, vector<8x1024xf32>
    tpu.vector_store %arg4[%c0_16, %c0_17], %46 {strides = array<i32>} : memref<8x1024xf32, #tpu.memory_space<vmem>>, vector<8x1024xf32>,
    return
  }
  func.func @transform_0(%arg0: i32, %arg1: i32) -> (i32, i32) {
    %c1_i32 = arith.constant 1 : i32
    %0 = arith.muli %arg0, %c1_i32 : i32
    %1 = arith.addi %0, %arg1 : i32
    %c0_i32 = arith.constant 0 : i32
    %c0_i32_0 = arith.constant 0 : i32
    return %1, %c0_i32 : i32, i32
  }
  func.func @transform_1(%arg0: i32, %arg1: i32) -> (i32, i32) {
    %c1_i32 = arith.constant 1 : i32
    %0 = arith.muli %arg0, %c1_i32 : i32
    %1 = arith.addi %0, %arg1 : i32
    %c0_i32 = arith.constant 0 : i32
    %c0_i32_0 = arith.constant 0 : i32
    return %1, %c0_i32 : i32, i32
  }
  func.func @transform_2(%arg0: i32, %arg1: i32) -> (i32, i32) {
    %c0_i32 = arith.constant 0 : i32
    %c0_i32_0 = arith.constant 0 : i32
    return %arg0, %c0_i32 : i32, i32
  }
}

</mosaic_0001>

<bundles_post_ra>
// kernel: tpu_custom_call.1
= control target key start
LH: loop header
LB: loop body
LE: loop exit
PB: predicated region body
PF: predicated region fallthrough
CT: control target
= control target key end

     0   :  { %7 = vsyncpa [#allocation3], 0  ;;  %s1526_s0 = inlined_call_operand.hbm [shape: f32[16,1024], index: 0, kind: input, shape index: {}]   ;;  %s1527_s1 = inlined_call_operand.hbm [shape: f32[16,1024], index: 1, kind: input, shape index: {}]   ;;  %s1528_s2 = inlined_call_operand.hbm [shape: f32[16,1024], index: 2, kind: output, shape index: {}]  }
   0x1   :  { %9 = vsyncpa [#allocation3 + $0x1], 0 }
   0x2   :  { %10 = vsyncpa [#allocation6], 0 }
   0x3   :  { %12 = vsyncpa [#allocation6 + $0x1], 0 }
   0x4   :  { %13 = vsyncpa [#allocation4], 0 }
   0x5   :  { %15 = vsyncpa [#allocation4 + $0x1], 0  ;;  %s988_s9 = smov 0   ;;  %s990_s10 = smov 0  }
   0x6   :  { %s992_s11 = smov 0   ;;  %s994_s12 = smov 0  }
   0x7   :  { %s996_s13 = smov 0   ;;  %s998_s14 = smov 0  }
   0x8 LB: > { %s684_s15 = sadd.s32 4294967295, %s968_s14   ;;  %s685_s16 = sadd.s32 4294967294, %s968_s14   ;;  %s968_s14 = sphi %s998_s14, %s21_s14   ;;  %s964_s13 = sphi %s996_s13, %s1569_s13   ;;  %s960_s12 = sphi %s994_s12, %s1568_s12   ;;  %s956_s11 = sphi %s992_s11, %s1567_s11   ;;  %s952_s10 = sphi %s990_s10, %s1566_s10   ;;  %s948_s9 = sphi %s988_s9, %s1565_s9  }
   0x9   : > { %s33_s17 = sadd.s32 1, %s964_s13  ;;  %s42_s18 = sadd.s32 1, %s956_s11 }
   0xa   : > { %p35_p0 = scmp.ge.s32.totalorder %s33_s17, 2  ;;  %p49_p1 = scmp.ne.s32.totalorder %s956_s11, %s952_s10 }
   0xb   : > { %p50_p2 = scmp.eq.s32.totalorder %s968_s14, 0  ;;  %p55_p3 = scmp.ne.s32.totalorder %s952_s10, %s948_s9 }
   0xc   : > { %s1571_s17 = smov (%p35_p0, %s33_s17), 0  ;;  %p56_p5 = scmp.eq.s32.totalorder %s684_s15, 0 }
   0xd   : > { %p1029_p4 = por %p50_p2, %p49_p1  ;;  %s39_s20 = ssub.s32 %s964_s13, %s1571_s17 }
   0xe   : > { %p107_p6 = scmp.eq.s32.totalorder %s684_s15, 1  ;;  %p40_p7 = scmp.eq.s32.totalorder %s39_s20, 0 }
   0xf   : > { %p1035_p8 = por %p56_p5, %p55_p3  ;;  %p113_p10 = scmp.eq.s32.totalorder %s685_s16, 1 }
  0x10   : > { %p1039_p9 = por %p107_p6, %p49_p1  ;;  %p723_p13 = scmp.lt.s32.totalorder %s968_s14, 2 }
  0x11   : > { %s1533_s21 = scalar_select %p1035_p8, 1, 0 }
  0x12   : > { %s1534_s22 = scalar_select %p1039_p9, 1, 0 }
  0x13   : > { %s1044_s23 = scalar_select %p40_p7, %s956_s11, %s42_s18  }
  0x14   : > { %p1046_p11 = por %p113_p10, %p55_p3  ;;  %s1053_s25 = sand.u32 1, %s956_s11  }
  0x15   : > { %s688_s26 = sshll.u32 %s1053_s25, 6  ;;  %s703_s27 = sshll.u32 %s964_s13, 10 }
  0x16   : > { %s1535_s24 = scalar_select %p1046_p11, 1, 0 }
  0x17   : > { %s1062_s30 = scalar_lea.hbm %s1526_s0, %s703_s27  ;;  %s137_s3 = scalar_lea.vmem [#allocation2], %s688_s26 }
  0x18   : > { %s146_s4 = sshll.u32 %s137_s3, 4  ;;  %p1070_p0 = pnand %p723_p13, %p1029_p4  ;;  %s1066_s4 = int_to_ptr.vmem [resolvable:$true] %s146_s4 }
  0x19   : > { %s134_s6 = scalar_lea.sflag [#allocation3], %s1053_s25  ;;  %s822_s7 = scalar_lea.hbm %s1062_s30, 1024 }
  0x1a   : > { %p823_p3 = scmp.ne.s32.totalorder %s1062_s30, %s822_s7  ;;  %p824_p5 = pneg %p1070_p0 }
  0x1b   : > { %s827_s16 = scalar_lea.hbm %s1526_s0, 2048  ;;  %p828_p4 = scmp.lt.u32.totalorder %s1062_s30, %s1526_s0 }
  0x1c   : > { %p825_p6 = pnand %p824_p5, %p823_p3  ;;  %p829_p10 = scmp.lt.u32.totalorder %s827_s16, %s822_s7 }
  0x1d   : > { %p831_p12 = scmp.lt.u32.totalorder %s822_s7, %s1062_s30 }
  0x1e   : > { %p826_p7 = pneg %p825_p6  ;;  %p830_p13 = por %p829_p10, %p828_p4 }
  0x20   : > { %p832_p1 = por %p831_p12, %p830_p13 }
  0x22   : > { %p833_p2 = pnand %p832_p1, %p826_p7 }
  0x24   : > { %836 = shalt.err (!%p833_p2)
}
  0x25   : > { %s837_s20 = scalar_lea.vmem %s1066_s4, 1024  ;;  %s970_s28 = smov [#allocation2]  }
  0x26   : > { %p838_p3 = scmp.ne.s32.totalorder %s1066_s4, %s837_s20  ;;  %s842_s29 = sshll.u32 %s970_s28, 4  ;;  %s843_s29 = int_to_ptr.vmem [resolvable:$false] %s842_s29 }
  0x27   : > { %s844_s3 = scalar_lea.vmem %s843_s29, 2048  ;;  %p845_p9 = scmp.lt.s32.totalorder %s1066_s4, %s843_s29 }
  0x28   : > { %p840_p6 = pnand %p838_p3, %p824_p5  ;;  %p846_p4 = scmp.lt.s32.totalorder %s844_s3, %s837_s20 }
  0x2a   : > { %p841_p11 = pneg %p840_p6  ;;  %p847_p10 = por %p846_p4, %p845_p9 }
  0x2c   : > { %p848_p12 = pnand %p847_p10, %p841_p11 }
  0x2e   : > { %851 = shalt.err (!%p848_p12)
}
  0x2f   : > { %715 = dma.hbm_to_vmem [thread:$0]  (!%p1070_p0), %s1062_s30, 1024, %s1066_s4, %s134_s6  }
  0x30   : > { %p1537_p1 = scmp.lt.s32.totalorder %s968_s14, 3  ;;  %p1538_p2 = scmp.ge.s32.totalorder %s968_s14, 1 }
  0x31   : > { %s1115_s16 = scalar_lea.hbm %s1527_s1, %s703_s27  ;;  %s157_s18 = scalar_lea.vmem [#allocation5], %s688_s26 }
  0x32   : > { %p1106_p7 = pnand %p1538_p2, %p1537_p1  ;;  %s166_s19 = sshll.u32 %s157_s18, 4  ;;  %s167_s19 = int_to_ptr.vmem [resolvable:$true] %s166_s19 }
  0x33   : > { %s154_s30 = scalar_lea.sflag [#allocation6], %s1053_s25  ;;  %s852_s4 = scalar_lea.hbm %s1115_s16, 1024 }
  0x34   : > { %s1539_s7 = scalar_select %p1106_p7, 1, 0 }
  0x35   : > { %p853_p9 = scmp.ne.s32.totalorder %s1115_s16, %s852_s4  ;;  %s857_s27 = scalar_lea.hbm %s1527_s1, 2048 }
  0x36   : > { %p858_p3 = scmp.lt.u32.totalorder %s1115_s16, %s1527_s1  ;;  %p859_p6 = scmp.lt.u32.totalorder %s857_s27, %s852_s4 }
  0x37   : > { %p855_p11 = pnand %p853_p9, %p824_p5  ;;  %p861_p10 = scmp.lt.u32.totalorder %s852_s4, %s1115_s16 }
  0x38   : > { %p860_p4 = por %p859_p6, %p858_p3 }
  0x39   : > { %p856_p13 = pneg %p855_p11 }
  0x3a   : > { %p862_p12 = por %p861_p10, %p860_p4 }
  0x3c   : > { %p863_p1 = pnand %p862_p12, %p856_p13 }
  0x3e   : > { %866 = shalt.err (!%p863_p1)
}
  0x3f   : > { %s867_s25 = scalar_lea.vmem %s167_s19, 1024  ;;  %s971_s26 = smov [#allocation5]  }
  0x40   : > { %p868_p2 = scmp.ne.s32.totalorder %s167_s19, %s867_s25  ;;  %s872_s3 = sshll.u32 %s971_s26, 4  ;;  %s873_s3 = int_to_ptr.vmem [resolvable:$false] %s872_s3 }
  0x41   : > { %s874_s8 = scalar_lea.vmem %s873_s3, 2048  ;;  %p875_p8 = scmp.lt.s32.totalorder %s167_s19, %s873_s3 }
  0x42   : > { %p870_p9 = pnand %p868_p2, %p824_p5  ;;  %p876_p7 = scmp.lt.s32.totalorder %s874_s8, %s867_s25 }
  0x44   : > { %p871_p11 = pneg %p870_p9  ;;  %p877_p3 = por %p876_p7, %p875_p8 }
  0x46   : > { %p878_p6 = pnand %p877_p3, %p871_p11 }
  0x48   : > { %881 = shalt.err (!%p878_p6)
}
  0x49   : > { %718 = dma.hbm_to_vmem [thread:$0]  (!%p1070_p0), %s1115_s16, 1024, %s167_s19, %s154_s30  }
  0x4a   : > { %p1540_p13 = scmp.ne.s32.totalorder %s1539_s7, 0 }
  0x4b   : > { %s1142_s15 = sand.u32 (!%p1540_p13), 1, %s952_s10   ;;  %p1541_p8 = scmp.ne.s32.totalorder (!%p1540_p13), %s1533_s21, 0 }
  0x4c   : > { %175 = sbr.rel (%p1540_p13) target bundleno = 189 (0xbd), region = 28  ;;  %s1145_s18 = sshll.u32 (!%p1540_p13), %s1142_s15, 6 }
  0x4d   : > { %s178_s4 = scalar_lea.sflag (!%p1540_p13), [#allocation3], %s1142_s15  ;;  %s1149_s6 = scalar_lea.vmem (!%p1540_p13), [#allocation2], %s1145_s18 }
  0x53   : > { %935 = dma.done.wait (%p1541_p8), %s178_s4, 1024  }
  0x54   : > { %937 = vsyncadd (%p1541_p8), %s178_s4, 4294966272  ;;  %s187_s5 = scalar_lea.sflag [#allocation6], %s1142_s15  ;;  %s1157_s7 = scalar_lea.vmem [#allocation5], %s1145_s18 }
  0x55   : > { %939 = dma.done.wait (%p1541_p8), %s187_s5, 1024  }
  0x56   : > { %941 = vsyncadd (%p1541_p8), %s187_s5, 4294966272  ;;  %v1164_v0 = vld [vmem:[%s1149_s6] sm:$0xff]  ;;  %v1167_v1 = vld [vmem:[%s1149_s6 + $0x8] sm:$0xff]  ;;  %s1410_s21 = scalar_lea.vmem [#allocation7], %s1145_s18  ;;  %s705_s16 = sshll.u32 %s960_s12, 10 }
  0x57   : > { %v246_v2 = vand.u32 2147483647, %v1164_v0  ;;  %v247_v3 = vand.u32 2147483647, %v1167_v1  ;;  %v1172_v4 = vld [vmem:[%s1149_s6 + $0x10] sm:$0xff]  ;;  %v1176_v10 = vld [vmem:[%s1149_s6 + $0x18] sm:$0xff]  ;;  %s1476_s27 = scalar_lea.hbm %s1528_s2, %s705_s16 }
  0x58   : > { %v248_v8 = vand.u32 2147483647, %v1172_v4  ;;  %v1179_v12 = vld [vmem:[%s1149_s6 + $0x20] sm:$0xff]  ;;  %v249_v14 = vand.u32 2147483647, %v1176_v10  ;;  %v1187_v20 = vld [vmem:[%s1149_s6 + $0x28] sm:$0xff] }
  0x59   : > { %v254_v5 = vsub.f32 0.0, %v246_v2  ;;  %v255_v6 = vsub.f32 0.0, %v247_v3  ;;  %v250_v16 = vand.u32 2147483647, %v1179_v12  ;;  %v1184_v17 = vld [vmem:[%s1157_s7] sm:$0xff]  ;;  %v1190_v21 = vld [vmem:[%s1157_s7 + $0x8] sm:$0xff] }
  0x5a   : > { %v256_v11 = vsub.f32 0.0, %v248_v8  ;;  %v257_v15 = vsub.f32 0.0, %v249_v14  ;;  %v278_v23 = vmax.f32 %v1164_v0, 0.0  ;;  %v462_v24 = vsub.f32 1.0, %v1184_v17  ;;  %v1195_v25 = vld [vmem:[%s1157_s7 + $0x10] sm:$0xff]  ;;  %v1234_v47 = vld [vmem:[%s1157_s7 + $0x18] sm:$0xff] }
  0x5b   : > { %v262_v7 = vmul.f32 1.442695, %v254_v5  ;;  %v264_v9 = vmul.f32 1.442695, %v255_v6  ;;  %v258_v19 = vsub.f32 0.0, %v250_v16  ;;  %v286_v28 = vmul.f32 %v1184_v17, %v1164_v0  ;;  %v1244_v51 = vld [vmem:[%s1149_s6 + $0x30] sm:$0xff] }
  0x5c   : > { %v266_v13 = vmul.f32 1.442695, %v256_v11  ;;  %v268_v18 = vmul.f32 1.442695, %v257_v15  ;;  %v251_v26 = vand.u32 2147483647, %v1187_v20  ;;  %v287_v35 = vmul.f32 %v1190_v21, %v1167_v1 }
  0x5d   : > { %774 = vpow2.f32 %v262_v7  ;;  %v270_v22 = vmul.f32 1.442695, %v258_v19  ;;  %v502_v29 = vmul.f32 0.25, %v1184_v17  ;;  %v463_v30 = vsub.f32 1.0, %v1190_v21  ;;  %v1274_v5 = vld [vmem:[%s1157_s7 + $0x20] sm:$0xff]  ;;  %s581_s19 = sshll.u32 %s1410_s21, 4  ;;  %s1478_s19 = int_to_ptr.vmem [resolvable:$true] %s581_s19 }
  0x5e   : > { %776 = vpow2.f32 %v264_v9  ;;  %v510_v33 = vmul.f32 0.75, %v462_v24  ;;  %v279_v34 = vmax.f32 %v1167_v1, 0.0  ;;  %v503_v37 = vmul.f32 0.25, %v1190_v21  ;;  %s567_s28 = scalar_lea.sflag [#allocation4], %s1142_s15  ;;  %s882_s29 = scalar_lea.vmem %s1478_s19, 1024 }
  0x5f   : > { %778 = vpow2.f32 %v266_v13  ;;  %v511_v38 = vmul.f32 0.75, %v463_v30  ;;  %v464_v39 = vsub.f32 1.0, %v1195_v25  ;;  %v280_v40 = vmax.f32 %v1172_v4, 0.0  ;;  %v1289_v13 = vld [vmem:[%s1149_s6 + $0x38] sm:$0xff]  ;;  %p883_p0 = scmp.ne.s32.totalorder %s1478_s19, %s882_s29  ;;  %p1562_p5 = scmp.ne.s32.totalorder %s1534_s22, 0 }
  0x60   : > { %780 = vpow2.f32 %v268_v18  ;;  %v288_v41 = vmul.f32 %v1195_v25, %v1172_v4  ;;  %v259_v42 = vsub.f32 0.0, %v251_v26  ;;  %v1227_v44 = vsub.f32 %v278_v23, %v286_v28  ;;  %s972_s12 = smov [#allocation7]  }
  0x61   : > { %782 = vpow2.f32 %v270_v22  ;;  %v504_v45 = vmul.f32 0.25, %v1195_v25  ;;  %v512_v46 = vmul.f32 0.75, %v464_v39  ;;  %v281_v49 = vmax.f32 %v1176_v10, 0.0  ;;  %p884_p7 = pnand %p883_p0, %p1562_p5  ;;  %s886_s25 = sshll.u32 %s972_s12, 4  ;;  %s887_s25 = int_to_ptr.vmem [resolvable:$false] %s886_s25 }
  0x62   : > { %v289_v50 = vmul.f32 %v1234_v47, %v1176_v10  ;;  %v1246_v52 = vadd.f32 %v510_v33, %v502_v29  ;;  %v1248_v53 = vsub.f32 %v279_v34, %v287_v35  ;;  %v1251_v54 = vadd.f32 %v511_v38, %v503_v37  ;;  %s888_s26 = scalar_lea.vmem %s887_s25, 2048  ;;  %p889_p10 = scmp.lt.s32.totalorder %s1478_s19, %s887_s25 }
  0x63   : > { %v1254_v56 = vsub.f32 %v280_v40, %v288_v41  ;;  %v272_v57 = vmul.f32 1.442695, %v259_v42  ;;  %v1531_v60 = vsub.f32 1.0, %v1234_v47  ;;  %v252_v61 = vand.u32 2147483647, %v1244_v51  ;;  %p885_p4 = pneg %p884_p7  ;;  %p890_p12 = scmp.lt.s32.totalorder %s888_s26, %s882_s29 }
  0x64   : > { %v1263_v62 = vadd.f32 %v512_v46, %v504_v45  ;;  %v1265_v63 = vsub.f32 %v281_v49, %v289_v50  ;;  %v1271_v3 = vmul.f32 0.25, %v1234_v47  ;;  %v1286_v11 = vmul.f32 %v1274_v5, %v1179_v12 }
  0x65   : > { %v1281_v8 = vmul.f32 0.75, %v1531_v60  ;;  %vm422_vm0 = vcmp.ge.f32.partialorder %v1164_v0, 0.0  ;;  %v260_v22 = vsub.f32 0.0, %v252_v61  ;;  %v253_v29 = vand.u32 2147483647, %v1289_v13  ;;  %p891_p1 = por %p890_p12, %p889_p10 }
  0x66   : > { %vm423_vm1 = vcmp.ge.f32.partialorder %v1167_v1, 0.0  ;;  %vm424_vm4 = vcmp.ge.f32.partialorder %v1172_v4, 0.0  ;;  %vm425_vm7 = vcmp.ge.f32.partialorder %v1176_v10, 0.0  ;;  %vm426_vm8 = vcmp.ge.f32.partialorder %v1179_v12, 0.0 }
  0x67   : > { %v1198_v27 = vpop.eup %774  ;;  %vm427_vm10 = vcmp.ge.f32.partialorder %v1187_v20, 0.0  ;;  %vm428_vm12 = vcmp.ge.f32.partialorder %v1244_v51, 0.0  ;;  %vm429_vm14 = vcmp.ge.f32.partialorder %v1289_v13, 0.0  ;;  %p892_p2 = pnand %p891_p1, %p885_p4 }
  0x68   : > { %v1204_v31 = vpop.eup %776  ;;  %v1207_v32 = vadd.f32 1.0, %v1198_v27  ;;  %v305_v55 = vmul.f32 -0.5, %v1198_v27  ;;  %v308_v15 = vand.u32 2147483647, %v1198_v27 }
  0x69   : > { %v1215_v36 = vadd.f32 1.0, %v1204_v31  ;;  %v1225_v43 = vpop.eup %778  ;;  %v314_v59 = vmul.f32 -0.5, %v1204_v31  ;;  %v317_v19 = vand.u32 2147483647, %v1204_v31 }
  0x6a   : > { %784 = vlog2.f32 %v1207_v32  ;;  %v1238_v48 = vadd.f32 1.0, %v1225_v43  ;;  %v1257_v58 = vpop.eup %780  ;;  %v323_v7 = vmul.f32 -0.5, %v1225_v43  ;;  %v306_v14 = vadd.f32 1.0, %v305_v55 }
  0x6b   : > { %786 = vrcp.f32 %v1207_v32  ;;  %v1268_v2 = vadd.f32 1.0, %v1257_v58  ;;  %v1276_v6 = vpop.eup %782  ;;  %v315_v18 = vadd.f32 1.0, %v314_v59  ;;  %v326_v26 = vand.u32 2147483647, %v1225_v43 }
  0x6c   : > { %788 = vlog2.f32 %v1215_v36  ;;  %v1293_v16 = vadd.f32 1.0, %v1276_v6  ;;  %v324_v34 = vadd.f32 1.0, %v323_v7  ;;  %v332_v35 = vmul.f32 -0.5, %v1257_v58 }
  0x6d   : > { %790 = vrcp.f32 %v1215_v36  ;;  %v341_v37 = vmul.f32 -0.5, %v1276_v6  ;;  %v307_v41 = vmul.f32 %v1198_v27, %v306_v14  ;;  %vm1307_vm2 = vcmp.lt.f32.partialorder %v308_v15, 0.0004427343 }
  0x6e   : > { %792 = vlog2.f32 %v1238_v48  ;;  %v1313_v49 = vmul.f32 %v1204_v31, %v315_v18  ;;  %vm1315_vm3 = vcmp.lt.f32.partialorder %v317_v19, 0.0004427343  ;;  %v335_v55 = vand.u32 2147483647, %v1257_v58 }
  0x6f   : > { %794 = vrcp.f32 %v1238_v48  ;;  %vm1322_vm5 = vcmp.lt.f32.partialorder %v326_v26, 0.0004427343  ;;  %v325_v18 = vmul.f32 %v1225_v43, %v324_v34  ;;  %v333_v19 = vadd.f32 1.0, %v332_v35 }
  0x70   : > { %796 = vpow2.f32 %v272_v57  ;;  %v274_v57 = vmul.f32 1.442695, %v260_v22  ;;  %vm1331_vm6 = vcmp.lt.f32.partialorder %v335_v55, 0.0004427343  ;;  %v344_v42 = vand.u32 2147483647, %v1276_v6 }
  0x71   : > { %798 = vrcp.f32 %v1268_v2 }
  0x72   : > { %800 = vlog2.f32 %v1268_v2  ;;  %vm1363_vm9 = vcmp.lt.f32.partialorder %v344_v42, 0.0004427343 }
  0x73   : > { %802 = vrcp.f32 %v1293_v16 }
  0x74   : > { %v785_v23 = vpop.eup %784  ;;  %804 = vlog2.f32 %v1293_v16 }
  0x75   : > { %v787_v33 = vpop.eup %786  ;;  %v304_v40 = vmul.f32 0.6931472, %v785_v23  ;;  %v342_v23 = vadd.f32 1.0, %v341_v37  ;;  %806 = vpow2.f32 %v274_v57 }
  0x76   : > { %v789_v38 = vpop.eup %788  ;;  %v398_v45 = vmul.f32 %v787_v33, %v1207_v32  ;;  %v261_v32 = vsub.f32 0.0, %v253_v29 }
  0x77   : > { %v791_v46 = vpop.eup %790  ;;  %v310_v28 = vsel %vm1307_vm2, %v307_v41, %v304_v40 }
  0x78   : > { %v793_v59 = vpop.eup %792  ;;  %v406_v61 = vsub.f32 2.0, %v398_v45  ;;  %v399_v7 = vmul.f32 %v791_v46, %v1215_v36  ;;  %v313_v36 = vmul.f32 0.6931472, %v789_v38  ;;  %v276_v40 = vmul.f32 1.442695, %v261_v32 }
  0x79   : > { %v795_v15 = vpop.eup %794  ;;  %v322_v26 = vmul.f32 0.6931472, %v793_v59  ;;  %v374_v41 = vadd.f32 %v310_v28, %v1227_v44  ;;  %v1342_v38 = vmul.f32 %v1276_v6, %v342_v23 }
  0x7a   : > { %v414_v22 = vmul.f32 %v787_v33, %v406_v61  ;;  %v407_v9 = vsub.f32 2.0, %v399_v7  ;;  %v400_v45 = vmul.f32 %v795_v15, %v1238_v48  ;;  %v1336_v29 = vpop.eup %796  ;;  %v334_v48 = vmul.f32 %v1257_v58, %v333_v19 }
  0x7b   : > { %v799_v33 = vpop.eup %798  ;;  %v319_v28 = vsel %vm1315_vm3, %v1313_v49, %v313_v36  ;;  %v328_v7 = vsel %vm1322_vm5, %v325_v18, %v322_v26  ;;  %808 = vpow2.f32 %v276_v40 }
  0x7c   : > { %v430_v34 = vmul.f32 %v1198_v27, %v414_v22  ;;  %v415_v35 = vmul.f32 %v791_v46, %v407_v9  ;;  %v408_v37 = vsub.f32 2.0, %v400_v45  ;;  %v801_v55 = vpop.eup %800  ;;  %v401_v9 = vmul.f32 %v799_v33, %v1268_v2 }
  0x7d   : > { %v803_v46 = vpop.eup %802  ;;  %v331_v50 = vmul.f32 0.6931472, %v801_v55  ;;  %v375_v45 = vadd.f32 %v319_v28, %v1248_v53  ;;  %v376_v36 = vadd.f32 %v328_v7, %v1254_v56  ;;  %v1552_v55 = vsub.f32 1.0, %v1234_v47 }
  0x7e   : > { %v438_v57 = vsel %vm422_vm0, %v414_v22, %v430_v34  ;;  %v431_v59 = vmul.f32 %v1204_v31, %v415_v35  ;;  %v416_v27 = vmul.f32 %v795_v15, %v408_v37  ;;  %v409_v2 = vsub.f32 2.0, %v401_v9  ;;  %v805_v19 = vpop.eup %804 }
  0x7f   : > { %v446_v61 = vsub.f32 1.0, %v438_v57  ;;  %v470_v44 = vmul.f32 %v462_v24, %v438_v57  ;;  %v402_v18 = vmul.f32 %v803_v46, %v1293_v16  ;;  %v1377_v34 = vpop.eup %806 }
  0x80   : > { %v439_v0 = vsel %vm423_vm1, %v415_v35, %v431_v59  ;;  %v432_v31 = vmul.f32 %v1225_v43, %v416_v27  ;;  %v417_v1 = vmul.f32 %v799_v33, %v409_v2  ;;  %v347_v43 = vadd.f32 1.0, %v1336_v29 }
  0x81   : > { %v454_v32 = vmul.f32 %v446_v61, %v1184_v17  ;;  %v447_v15 = vsub.f32 1.0, %v439_v0  ;;  %v471_v24 = vmul.f32 %v463_v30, %v439_v0  ;;  %v410_v26 = vsub.f32 2.0, %v402_v18 }
  0x82   : > { %v440_v14 = vsel %vm424_vm4, %v416_v27, %v432_v31  ;;  %v433_v4 = vmul.f32 %v1257_v58, %v417_v1  ;;  %810 = vrcp.f32 %v347_v43  ;;  %v350_v2 = vmul.f32 -0.5, %v1336_v29 }
  0x83   : > { %v478_v23 = vadd.f32 %v470_v44, %v454_v32  ;;  %v455_v17 = vmul.f32 %v447_v15, %v1190_v21  ;;  %v448_v22 = vsub.f32 1.0, %v440_v14  ;;  %v472_v30 = vmul.f32 %v464_v39, %v440_v14  ;;  %v243_v14 = vld [vmem:[%s1157_s7 + $0x28] sm:$0xff] }
  0x84   : > { %v337_v21 = vsel %vm1331_vm6, %v334_v48, %v331_v50  ;;  %v441_v40 = vsel %vm425_vm7, %v417_v1, %v433_v4  ;;  %v340_v39 = vmul.f32 0.6931472, %v805_v19  ;;  %v418_v33 = vmul.f32 %v803_v46, %v410_v26 }
  0x85   : > { %v486_v16 = vmul.f32 %v478_v23, %v478_v23  ;;  %v479_v35 = vadd.f32 %v471_v24, %v455_v17  ;;  %v456_v37 = vmul.f32 %v448_v22, %v1195_v25  ;;  %v449_v58 = vsub.f32 1.0, %v441_v40 }
  0x86   : > { %v473_v57 = vmul.f32 %v1552_v55, %v441_v40  ;;  %v434_v59 = vmul.f32 %v1276_v6, %v418_v33  ;;  %812 = vlog2.f32 %v347_v43  ;;  %v1388_v25 = vadd.f32 1.0, %v1377_v34 }
  0x87   : > { %v494_v53 = vmul.f32 %v486_v16, %v374_v41  ;;  %v487_v56 = vmul.f32 %v479_v35, %v479_v35  ;;  %v480_v42 = vadd.f32 %v472_v30, %v456_v37  ;;  %v457_v27 = vmul.f32 %v449_v58, %v1234_v47  ;;  %v1392_v41 = vpop.eup %808 }
  0x88   : > { %v377_v9 = vadd.f32 %v337_v21, %v1265_v63  ;;  %v521_v46 = vadd.f32 %v1281_v8, %v1271_v3  ;;  %v1553_v6 = vmax.f32 %v1179_v12, 0.0  ;;  %v442_v44 = vsel %vm426_vm8, %v418_v33, %v434_v59 }
  0x89   : > { %v526_v60 = vmul.f32 %v1246_v52, %v494_v53  ;;  %v495_v10 = vmul.f32 %v487_v56, %v375_v45  ;;  %v488_v48 = vmul.f32 %v480_v42, %v480_v42  ;;  %v481_v7 = vadd.f32 %v473_v57, %v457_v27 }
  0x8a   : > { %v298_v61 = vsub.f32 %v1553_v6, %v1286_v11  ;;  %v346_v47 = vsel %vm1363_vm9, %v1342_v38, %v340_v39  ;;  %v450_v0 = vsub.f32 1.0, %v442_v44  ;;  %v1554_v63 = vsub.f32 1.0, %v1274_v5  ;;  %v244_v39 = vld [vmem:[%s1157_s7 + $0x30] sm:$0xff] }
  0x8b   : > { %v527_v52 = vmul.f32 %v1251_v54, %v495_v10  ;;  %v496_v28 = vmul.f32 %v488_v48, %v376_v36  ;;  %v506_v3 = vmul.f32 0.25, %v1274_v5  ;;  %558 = vst [vmem:[%s1410_s21] sm:$0xff] %v526_v60  ;;  %v489_v54 = vmul.f32 %v481_v7, %v481_v7 }
  0x8c   : > { %v474_v31 = vmul.f32 %v1554_v63, %v442_v44  ;;  %814 = vrcp.f32 %v1388_v25  ;;  %v458_v8 = vmul.f32 %v450_v0, %v1274_v5  ;;  %v1555_v11 = vmov %v1554_v63  ;;  %v811_v24 = vpop.eup %810 }
  0x8d   : > { %v528_v12 = vmul.f32 %v1263_v62, %v496_v28  ;;  %v514_v38 = vmul.f32 0.75, %v1555_v11  ;;  %v365_v32 = vadd.f32 1.0, %v1392_v41  ;;  %559 = vst [vmem:[%s1410_s21 + $0x8] sm:$0xff] %v527_v52  ;;  %v497_v15 = vmul.f32 %v489_v54, %v377_v9  ;;  %v245_v11 = vld [vmem:[%s1157_s7 + $0x38] sm:$0xff] }
  0x8e   : > { %v378_v50 = vadd.f32 %v346_v47, %v298_v61  ;;  %v482_v49 = vadd.f32 %v474_v31, %v458_v8  ;;  %816 = vlog2.f32 %v1388_v25  ;;  %v403_v1 = vmul.f32 %v811_v24, %v347_v43 }
  0x8f   : > { %560 = vst [vmem:[%s1410_s21 + $0x10] sm:$0xff] %v528_v12  ;;  %v529_v62 = vmul.f32 %v521_v46, %v497_v15  ;;  %818 = vrcp.f32 %v365_v32  ;;  %v522_v19 = vadd.f32 %v514_v38, %v506_v3  ;;  %v351_v23 = vadd.f32 1.0, %v350_v2 }
  0x90   : > { %v813_v18 = vpop.eup %812  ;;  %v490_v5 = vmul.f32 %v482_v49, %v482_v49  ;;  %v353_v17 = vand.u32 2147483647, %v1336_v29  ;;  %v411_v22 = vsub.f32 2.0, %v403_v1  ;;  %v467_v30 = vsub.f32 1.0, %v243_v14 }
  0x91   : > { %v283_v36 = vmax.f32 %v1187_v20, 0.0  ;;  %v291_v4 = vmul.f32 %v243_v14, %v1187_v20  ;;  %v507_v26 = vmul.f32 0.25, %v243_v14  ;;  %561 = vst [vmem:[%s1410_s21 + $0x18] sm:$0xff] %v529_v62  ;;  %v359_v43 = vmul.f32 -0.5, %v1377_v34 }
  0x92   : > { %v498_v45 = vmul.f32 %v490_v5, %v378_v50  ;;  %v419_v16 = vmul.f32 %v811_v24, %v411_v22  ;;  %v515_v35 = vmul.f32 0.75, %v467_v30  ;;  %820 = vlog2.f32 %v365_v32 }
  0x93   : > { %v349_v21 = vmul.f32 0.6931472, %v813_v18  ;;  %v352_v40 = vmul.f32 %v1336_v29, %v351_v23  ;;  %vm1432_vm11 = vcmp.lt.f32.partialorder %v353_v17, 0.0004427343  ;;  %v284_v42 = vmax.f32 %v1244_v51, 0.0 }
  0x94   : > { %v530_v37 = vmul.f32 %v522_v19, %v498_v45  ;;  %v435_v56 = vmul.f32 %v1336_v29, %v419_v16  ;;  %v292_v58 = vmul.f32 %v244_v39, %v1244_v51  ;;  %v299_v55 = vsub.f32 %v283_v36, %v291_v4 }
  0x95   : > { %v523_v60 = vadd.f32 %v515_v35, %v507_v26  ;;  %v360_v10 = vadd.f32 1.0, %v359_v43  ;;  %v368_v20 = vmul.f32 -0.5, %v1392_v41  ;;  %v355_v27 = vsel %vm1432_vm11, %v352_v40, %v349_v21 }
  0x96   : > { %v815_v33 = vpop.eup %814  ;;  %v443_v59 = vsel %vm427_vm10, %v419_v16, %v435_v56  ;;  %562 = vst [vmem:[%s1410_s21 + $0x20] sm:$0xff] %v530_v37  ;;  %v300_v61 = vsub.f32 %v284_v42, %v292_v58  ;;  %v362_v44 = vand.u32 2147483647, %v1377_v34  ;;  %v508_v7 = vmul.f32 0.25, %v244_v39 }
  0x97   : > { %v404_v57 = vmul.f32 %v815_v33, %v1388_v25  ;;  %v451_v9 = vsub.f32 1.0, %v443_v59  ;;  %v475_v46 = vmul.f32 %v467_v30, %v443_v59  ;;  %v468_v25 = vsub.f32 1.0, %v244_v39 }
  0x98   : > { %v817_v48 = vpop.eup %816  ;;  %v379_v0 = vadd.f32 %v355_v27, %v299_v55  ;;  %v361_v63 = vmul.f32 %v1377_v34, %v360_v10  ;;  %v369_v3 = vadd.f32 1.0, %v368_v20  ;;  %vm1449_vm13 = vcmp.lt.f32.partialorder %v362_v44, 0.0004427343 }
  0x99   : > { %v412_v29 = vsub.f32 2.0, %v404_v57  ;;  %v819_v6 = vpop.eup %818  ;;  %v459_v52 = vmul.f32 %v451_v9, %v243_v14  ;;  %v516_v31 = vmul.f32 0.75, %v468_v25  ;;  %v358_v54 = vmul.f32 0.6931472, %v817_v48 }
  0x9a   : > { %v405_v47 = vmul.f32 %v819_v6, %v365_v32  ;;  %v285_v24 = vmax.f32 %v1289_v13, 0.0  ;;  %v293_v32 = vmul.f32 %v245_v11, %v1289_v13  ;;  %v371_v50 = vand.u32 2147483647, %v1392_v41 }
  0x9b   : > { %v420_v28 = vmul.f32 %v815_v33, %v412_v29  ;;  %v483_v12 = vadd.f32 %v475_v46, %v459_v52  ;;  %v370_v18 = vmul.f32 %v1392_v41, %v369_v3  ;;  %v469_v5 = vsub.f32 1.0, %v245_v11 }
  0x9c   : > { %v413_v38 = vsub.f32 2.0, %v405_v47  ;;  %v821_v2 = vpop.eup %820  ;;  %v364_v23 = vsel %vm1449_vm13, %v361_v63, %v358_v54  ;;  %vm1463_vm15 = vcmp.lt.f32.partialorder %v371_v50, 0.0004427343  ;;  %v301_v13 = vsub.f32 %v285_v24, %v293_v32 }
  0x9d   : > { %v436_v8 = vmul.f32 %v1377_v34, %v420_v28  ;;  %v491_v49 = vmul.f32 %v483_v12, %v483_v12  ;;  %v367_v17 = vmul.f32 0.6931472, %v821_v2  ;;  %v380_v4 = vadd.f32 %v364_v23, %v300_v61 }
  0x9e   : > { %v421_v62 = vmul.f32 %v819_v6, %v413_v38  ;;  %v524_v43 = vadd.f32 %v516_v31, %v508_v7  ;;  %v509_v40 = vmul.f32 0.25, %v245_v11 }
  0x9f   : > { %v444_v14 = vsel %vm428_vm12, %v420_v28, %v436_v8  ;;  %v499_v19 = vmul.f32 %v491_v49, %v379_v0 }
  0xa0   : > { %v452_v34 = vsub.f32 1.0, %v444_v14  ;;  %v476_v1 = vmul.f32 %v468_v25, %v444_v14  ;;  %v437_v22 = vmul.f32 %v1392_v41, %v421_v62  ;;  %v373_v41 = vsel %vm1463_vm15, %v370_v18, %v367_v17 }
  0xa1   : > { %v531_v45 = vmul.f32 %v523_v60, %v499_v19  ;;  %v381_v53 = vadd.f32 %v373_v41, %v301_v13 }
  0xa2   : > { %v460_v30 = vmul.f32 %v452_v34, %v244_v39  ;;  %v445_v36 = vsel %vm429_vm14, %v421_v62, %v437_v22  ;;  %v517_v39 = vmul.f32 0.75, %v469_v5 }
  0xa3   : > { %v453_v16 = vsub.f32 1.0, %v445_v36  ;;  %v477_v35 = vmul.f32 %v469_v5, %v445_v36  ;;  %563 = vst [vmem:[%s1410_s21 + $0x28] sm:$0xff] %v531_v45 }
  0xa4   : > { %v484_v26 = vadd.f32 %v476_v1, %v460_v30  ;;  %v525_v55 = vadd.f32 %v517_v39, %v509_v40 }
  0xa5   : > { %v461_v21 = vmul.f32 %v453_v16, %v245_v11 }
  0xa6   : > { %v492_v37 = vmul.f32 %v484_v26, %v484_v26 }
  0xa7   : > { %v485_v56 = vadd.f32 %v477_v35, %v461_v21 }
  0xa8   : > { %v500_v33 = vmul.f32 %v492_v37, %v380_v4 }
  0xa9   : > { %v493_v58 = vmul.f32 %v485_v56, %v485_v56 }
  0xaa   : > { %v532_v42 = vmul.f32 %v524_v43, %v500_v33 }
  0xab   : > { %v501_v57 = vmul.f32 %v493_v58, %v381_v53 }
  0xac   : > { %564 = vst [vmem:[%s1410_s21 + $0x30] sm:$0xff] %v532_v42 }
  0xad   : > { %v533_v59 = vmul.f32 %v525_v55, %v501_v57 }
  0xaf   : > { %565 = vst [vmem:[%s1410_s21 + $0x38] sm:$0xff] %v533_v59 }
  0xb0   : > { %895 = shalt.err (!%p892_p2)
}
  0xb1   : > { %s896_s3 = scalar_lea.hbm %s1476_s27, 1024  ;;  %s900_s18 = scalar_lea.hbm %s1528_s2, 2048 }
  0xb2   : > { %p897_p9 = scmp.ne.s32.totalorder %s1476_s27, %s896_s3  ;;  %p901_p6 = scmp.lt.u32.totalorder %s1476_s27, %s1528_s2 }
  0xb3   : > { %p902_p13 = scmp.lt.u32.totalorder %s900_s18, %s896_s3  ;;  %p904_p0 = scmp.lt.u32.totalorder %s896_s3, %s1476_s27 }
  0xb4   : > { %p898_p11 = pnand %p897_p9, %p1562_p5 }
  0xb5   : > { %p903_p8 = por %p902_p13, %p901_p6 }
  0xb6   : > { %p899_p3 = pneg %p898_p11 }
  0xb7   : > { %p905_p7 = por %p904_p0, %p903_p8 }
  0xb9   : > { %p906_p4 = pnand %p905_p7, %p899_p3 }
  0xbb   : > { %909 = shalt.err (!%p906_p4)
}
  0xbc   : > { %710 = dma.vmem_to_hbm [thread:$0]  (%p1562_p5), %s1478_s19, 1024, %s1476_s27, %s567_s28  }
  0xbd PF: > { %s593_s5 = sand.u32 1, %s948_s9   ;;  %p1563_p10 = scmp.ne.s32.totalorder %s1535_s24, 0 }
  0xbe   : > { %p1564_p12 = scmp.ge.s32.totalorder %s968_s14, 2  ;;  %s594_s7 = scalar_lea.sflag [#allocation4], %s593_s5 }
  0xc0   : > { %p720_p1 = pnand %p1564_p12, %p1563_p10 }
  0xc2   : > { %943 = dma.done.wait (!%p720_p1), %s594_s7, 1024  }
  0xc3   : > { %945 = vsyncadd (!%p720_p1), %s594_s7, 4294966272  ;;  %s21_s14 = sadd.s32 1, %s968_s14   ;;  %s1565_s9 = smov %s952_s10 }
  0xc4   : > { %p18_p2 = scmp.ge.s32.totalorder %s21_s14, 4   ;;  %s1566_s10 = smov %s956_s11 }
  0xc5   : > { %s1567_s11 = smov %s1044_s23  ;;  %s1568_s12 = smov %s964_s13 }
  0xc6   : > { %s1569_s13 = smov %s1571_s17  ;;  %20 = sbr.rel (!%p18_p2) target bundleno = 8 (0x8), region = 90 }
  0xcd   :  { %599 = vsyncpa [#allocation3], 1 }
  0xce   :  { %601 = vsyncpa [#allocation3 + $0x1], 1 }
  0xcf   :  { %602 = vsyncpa [#allocation6], 1 }
  0xd0   :  { %604 = vsyncpa [#allocation6 + $0x1], 1 }
  0xd1   :  { %605 = vsyncpa [#allocation4], 1 }
  0xd2   :  { %607 = vsyncpa [#allocation4 + $0x1], 1 }

</bundles_post_ra>
